<compile_context>
chip_gen: v6e
topology: v6e:2x2x1
jax: 0.10.0
libtpu: 0.0.40
codegen_flags: <defaults>
</compile_context>

<pallas_src>
import functools

import jax
import jax.numpy as jnp
from jax.experimental import pallas as pl
from jax.experimental.pallas import tpu as pltpu

NEG_SLOPE = 0.01  # F.leaky_relu default negative slope
LANE = 128
SUBLANE = 8


def _leaky_relu(x):
    return jnp.where(x > 0, x, NEG_SLOPE * x)


def _round_up(n, mult):
    return n + (-n) % mult


def _pad_axis_to(a, axis, target):
    pad = target - a.shape[axis]
    if pad <= 0:
        return a
    widths = [(0, 0)] * a.ndim
    widths[axis] = (0, pad)
    return jnp.pad(a, widths)


def _critic_kernel(x_ref, w1_ref, b1_ref, w2_ref, b2_ref, w3_ref, b3_ref,
                   o_ref, *, compute_dtype):
    # layer1 + leaky_relu (MXU matmul, f32 accumulate; bias add / VPU math f32)
    x = x_ref[...].astype(compute_dtype)
    h = jnp.dot(x, w1_ref[...], preferred_element_type=jnp.float32) + b1_ref[...]
    h = _leaky_relu(h)
    # dropout (eval mode) -> identity

    # layer2 + leaky_relu
    h = jnp.dot(h.astype(compute_dtype), w2_ref[...],
                preferred_element_type=jnp.float32) + b2_ref[...]
    h = _leaky_relu(h)
    # dropout (eval mode) -> identity

    # layer3 (no activation), stored at native out_dim width
    o_ref[...] = (
        jnp.dot(h.astype(compute_dtype), w3_ref[...],
                preferred_element_type=jnp.float32) + b3_ref[...]
    ).astype(o_ref.dtype)


def prepare_critic_params(params, compute_dtype=jnp.float32):
    """One-time parameter prep (call once, NOT per forward):
      * zero-pad the hidden dim to a multiple of 128 (value-preserving: padded
        h columns stay 0 through leaky_relu; padded weight rows contribute 0),
      * cast weights to the matmul compute dtype (bf16 halves resident VMEM and
        the one-time weight DMA on v6e/v7x); biases stay f32 (added to f32 acc).
    Input/output feature dims are left at native width — they are streamed."""
    w1, b1, w2, b2, w3, b3 = params
    h_p = _round_up(w1.shape[1], LANE)
    w1_p = _pad_axis_to(w1, 1, h_p).astype(compute_dtype)
    b1_p = _pad_axis_to(b1, 1, h_p).astype(jnp.float32)
    w2_p = _pad_axis_to(_pad_axis_to(w2, 0, h_p), 1, h_p).astype(compute_dtype)
    b2_p = _pad_axis_to(b2, 1, h_p).astype(jnp.float32)
    w3_p = _pad_axis_to(w3, 0, h_p).astype(compute_dtype)
    b3_p = b3.astype(jnp.float32)
    return (w1_p, b1_p, w2_p, b2_p, w3_p, b3_p)


@functools.partial(jax.jit, static_argnames=("block_b", "compute_dtype"))
def critic_forward(x, prepared_params, *, block_b=4096,
                   compute_dtype=jnp.float32):
    """x: [B, input_dim] f32. prepared_params from prepare_critic_params().
    Returns [B, output_dim] f32."""
    w1, b1, w2, b2, w3, b3 = prepared_params
    B, in_dim = x.shape
    h_p = w1.shape[1]
    out_dim = w3.shape[1]

    # Batch tile: multiple of 8, capped by block_b; also capped at ceil(B/2) so
    # the "parallel" batch axis has >= 2 grid steps (both v7x TCs get work).
    # No batch padding: Pallas handles the partial last block (rows independent).
    tb = min(_round_up(block_b, SUBLANE), _round_up(pl.cdiv(B, 2), SUBLANE))
    tb = max(tb, SUBLANE)
    grid_b = pl.cdiv(B, tb)

    resident = lambda shape: pl.BlockSpec(shape, lambda i: (0, 0))

    nbytes = lambda a: a.size * a.dtype.itemsize
    w_bytes = sum(nbytes(a) for a in (w1, b1, w2, b2, w3, b3))
    flops = 2 * B * (in_dim * h_p + h_p * h_p + h_p * out_dim)
    bytes_accessed = nbytes(x) + w_bytes + B * out_dim * 4

    # VMEM: double-buffered x/out tiles + (still double-buffered) resident
    # weights + slack; capped below v7x's 64 MiB physical VMEM.
    vmem_needed = (2 * tb * (in_dim * x.dtype.itemsize + out_dim * 4)
                   + 2 * w_bytes + (2 << 20))
    vmem_limit = int(min(max(vmem_needed, 32 << 20), 60 << 20))

    return pl.pallas_call(
        functools.partial(_critic_kernel, compute_dtype=compute_dtype),
        out_shape=jax.ShapeDtypeStruct((B, out_dim), jnp.float32),
        grid=(grid_b,),
        in_specs=[
            pl.BlockSpec((tb, in_dim), lambda i: (i, 0)),  # streamed, native width
            resident(w1.shape), resident(b1.shape),        # weights DMA'd once
            resident(w2.shape), resident(b2.shape),
            resident(w3.shape), resident(b3.shape),
        ],
        out_specs=pl.BlockSpec((tb, out_dim), lambda i: (i, 0)),  # native width
        compiler_params=pltpu.CompilerParams(
            dimension_semantics=("parallel",),   # megacore split on v7x
            vmem_limit_bytes=vmem_limit,
        ),
        cost_estimate=pl.CostEstimate(
            flops=flops, transcendentals=0, bytes_accessed=bytes_accessed),
    )(x, w1, b1, w2, b2, w3, b3)


def init_critic_params(key, input_dim, output_dim, n_hidden):
    """PyTorch Linear default init: U(-1/sqrt(fan_in), 1/sqrt(fan_in)).
    Weights stored [in, out] (transposed vs torch), biases [1, out]."""
    ks = jax.random.split(key, 6)

    def linear(kw, kb, fan_in, fan_out):
        bound = 1.0 / jnp.sqrt(fan_in)
        w = jax.random.uniform(kw, (fan_in, fan_out), jnp.float32, -bound, bound)
        b = jax.random.uniform(kb, (1, fan_out), jnp.float32, -bound, bound)
        return w, b

    w1, b1 = linear(ks[0], ks[1], input_dim, n_hidden)
    w2, b2 = linear(ks[2], ks[3], n_hidden, n_hidden)
    w3, b3 = linear(ks[4], ks[5], n_hidden, output_dim)
    return (w1, b1, w2, b2, w3, b3)


def critic_reference(x, params):
    """Pure-JAX reference for correctness check (eval-mode dropout)."""
    w1, b1, w2, b2, w3, b3 = params
    h = _leaky_relu(x @ w1 + b1)
    h = _leaky_relu(h @ w2 + b2)
    return h @ w3 + b3


if __name__ == "__main__":
    key = jax.random.PRNGKey(0)
    k_params, k_x = jax.random.split(key)

    batch, input_dim, output_dim, n_hidden = 40, 16, 4, 32
    params = init_critic_params(k_params, input_dim, output_dim, n_hidden)
    x = jax.random.normal(k_x, (batch, input_dim), jnp.float32)
    ref = critic_reference(x, params)

    # f32 path; small block_b exercises a multi-step grid with a partial block.
    prepared_f32 = prepare_critic_params(params, jnp.float32)
    out = critic_forward(x, prepared_f32, block_b=16)
    jax.block_until_ready(out)
    assert out.shape == (batch, output_dim), out.shape
    assert jnp.allclose(out, ref, atol=1e-4, rtol=1e-4)

    # bf16-weight path (MXU-native on v6e/v7x); looser tolerance is expected.
    prepared_bf16 = prepare_critic_params(params, jnp.bfloat16)
    out_bf16 = critic_forward(x, prepared_bf16, compute_dtype=jnp.bfloat16)
    jax.block_until_ready(out_bf16)
    assert out_bf16.shape == (batch, output_dim), out_bf16.shape
    assert jnp.allclose(out_bf16, ref, atol=0.15, rtol=0.15)

    print("KERNEL_OK")
</pallas_src>

<mosaic_0001>
module attributes {stable_mosaic.version = 11 : i64} {
  func.func @_critic_kernel(%arg0: i32, %arg1: memref<16x16xf32, #tpu.memory_space<vmem>>, %arg2: memref<16x128xf32, #tpu.memory_space<vmem>>, %arg3: memref<1x128xf32, #tpu.memory_space<vmem>>, %arg4: memref<128x128xf32, #tpu.memory_space<vmem>>, %arg5: memref<1x128xf32, #tpu.memory_space<vmem>>, %arg6: memref<128x4xf32, #tpu.memory_space<vmem>>, %arg7: memref<1x4xf32, #tpu.memory_space<vmem>>, %arg8: memref<16x4xf32, #tpu.memory_space<vmem>>) attributes {dimension_semantics = [#tpu.dimension_semantics<parallel>], iteration_bounds = array<i64: 3>, scalar_prefetch = 0 : i64, scratch_operands = 0 : i64, tpu.core_type = #tpu.core_type<tc>, window_params = [{transform_indices = @transform_0, window_bounds = array<i64: 16, 16>}, {pipeline_mode = #tpu.pipeline_mode<synchronous>, transform_indices = @transform_1, window_bounds = array<i64: 16, 128>}, {pipeline_mode = #tpu.pipeline_mode<synchronous>, transform_indices = @transform_2, window_bounds = array<i64: 1, 128>}, {pipeline_mode = #tpu.pipeline_mode<synchronous>, transform_indices = @transform_3, window_bounds = array<i64: 128, 128>}, {pipeline_mode = #tpu.pipeline_mode<synchronous>, transform_indices = @transform_4, window_bounds = array<i64: 1, 128>}, {pipeline_mode = #tpu.pipeline_mode<synchronous>, transform_indices = @transform_5, window_bounds = array<i64: 128, 4>}, {pipeline_mode = #tpu.pipeline_mode<synchronous>, transform_indices = @transform_6, window_bounds = array<i64: 1, 4>}, {transform_indices = @transform_7, window_bounds = array<i64: 16, 4>}]} {
    %c0 = arith.constant 0 : index
    %c0_0 = arith.constant 0 : index
    %0 = vector.load %arg1[%c0, %c0_0] : memref<16x16xf32, #tpu.memory_space<vmem>>, vector<16x16xf32>
    %c0_1 = arith.constant 0 : index
    %c0_2 = arith.constant 0 : index
    %1 = vector.load %arg2[%c0_1, %c0_2] : memref<16x128xf32, #tpu.memory_space<vmem>>, vector<16x128xf32>
    %cst = arith.constant dense<0.000000e+00> : vector<16x128xf32>
    %2 = tpu.matmul %0, %1, %cst {dimension_numbers = #tpu.dot_dimension_numbers<[1], [0], [0], [1], [0, 0, 1, 1], [], []>} : vector<16x16xf32>, vector<16x128xf32>, vector<16x128xf32> -> vector<16x128xf32>
    %c0_3 = arith.constant 0 : index
    %c0_4 = arith.constant 0 : index
    %3 = vector.load %arg3[%c0_3, %c0_4] : memref<1x128xf32, #tpu.memory_space<vmem>>, vector<1x128xf32>
    %4 = vector.broadcast %3 : vector<1x128xf32> to vector<16x128xf32>
    %5 = arith.addf %2, %4 : vector<16x128xf32>
    %cst_5 = arith.constant 0.000000e+00 : f32
    %6 = vector.broadcast %cst_5 : f32 to vector<16x128xf32>
    %7 = arith.cmpf ogt, %5, %6 : vector<16x128xf32>
    %cst_6 = arith.constant 0.00999999977 : f32
    %8 = vector.broadcast %cst_6 : f32 to vector<16x128xf32>
    %9 = arith.mulf %8, %5 : vector<16x128xf32>
    %10 = arith.select %7, %5, %9 : vector<16x128xi1>, vector<16x128xf32>
    %c0_7 = arith.constant 0 : index
    %c0_8 = arith.constant 0 : index
    %11 = vector.load %arg4[%c0_7, %c0_8] : memref<128x128xf32, #tpu.memory_space<vmem>>, vector<128x128xf32>
    %cst_9 = arith.constant dense<0.000000e+00> : vector<16x128xf32>
    %12 = tpu.matmul %10, %11, %cst_9 {dimension_numbers = #tpu.dot_dimension_numbers<[1], [0], [0], [1], [0, 0, 1, 1], [], []>} : vector<16x128xf32>, vector<128x128xf32>, vector<16x128xf32> -> vector<16x128xf32>
    %c0_10 = arith.constant 0 : index
    %c0_11 = arith.constant 0 : index
    %13 = vector.load %arg5[%c0_10, %c0_11] : memref<1x128xf32, #tpu.memory_space<vmem>>, vector<1x128xf32>
    %14 = vector.broadcast %13 : vector<1x128xf32> to vector<16x128xf32>
    %15 = arith.addf %12, %14 : vector<16x128xf32>
    %cst_12 = arith.constant 0.000000e+00 : f32
    %16 = vector.broadcast %cst_12 : f32 to vector<16x128xf32>
    %17 = arith.cmpf ogt, %15, %16 : vector<16x128xf32>
    %cst_13 = arith.constant 0.00999999977 : f32
    %18 = vector.broadcast %cst_13 : f32 to vector<16x128xf32>
    %19 = arith.mulf %18, %15 : vector<16x128xf32>
    %20 = arith.select %17, %15, %19 : vector<16x128xi1>, vector<16x128xf32>
    %c0_14 = arith.constant 0 : index
    %c0_15 = arith.constant 0 : index
    %21 = vector.load %arg6[%c0_14, %c0_15] : memref<128x4xf32, #tpu.memory_space<vmem>>, vector<128x4xf32>
    %cst_16 = arith.constant dense<0.000000e+00> : vector<16x4xf32>
    %22 = tpu.matmul %20, %21, %cst_16 {dimension_numbers = #tpu.dot_dimension_numbers<[1], [0], [0], [1], [0, 0, 1, 1], [], []>} : vector<16x128xf32>, vector<128x4xf32>, vector<16x4xf32> -> vector<16x4xf32>
    %c0_17 = arith.constant 0 : index
    %c0_18 = arith.constant 0 : index
    %23 = vector.load %arg7[%c0_17, %c0_18] : memref<1x4xf32, #tpu.memory_space<vmem>>, vector<1x4xf32>
    %24 = vector.broadcast %23 : vector<1x4xf32> to vector<16x4xf32>
    %25 = arith.addf %22, %24 : vector<16x4xf32>
    %c0_19 = arith.constant 0 : index
    %c0_20 = arith.constant 0 : index
    %26 = vector.load %arg8[%c0_19, %c0_20] : memref<16x4xf32, #tpu.memory_space<vmem>>, vector<16x4xf32>
    tpu.vector_store %arg8[%c0_19, %c0_20], %25 {strides = array<i32>} : memref<16x4xf32, #tpu.memory_space<vmem>>, vector<16x4xf32>,
    return
  }
  func.func @transform_0(%arg0: i32) -> (i32, i32) {
    %c0_i32 = arith.constant 0 : i32
    %c0_i32_0 = arith.constant 0 : i32
    return %arg0, %c0_i32 : i32, i32
  }
  func.func @transform_1(%arg0: i32) -> (i32, i32) {
    %c0_i32 = arith.constant 0 : i32
    %c0_i32_0 = arith.constant 0 : i32
    %c0_i32_1 = arith.constant 0 : i32
    return %c0_i32, %c0_i32_0 : i32, i32
  }
  func.func @transform_2(%arg0: i32) -> (i32, i32) {
    %c0_i32 = arith.constant 0 : i32
    %c0_i32_0 = arith.constant 0 : i32
    %c0_i32_1 = arith.constant 0 : i32
    return %c0_i32, %c0_i32_0 : i32, i32
  }
  func.func @transform_3(%arg0: i32) -> (i32, i32) {
    %c0_i32 = arith.constant 0 : i32
    %c0_i32_0 = arith.constant 0 : i32
    %c0_i32_1 = arith.constant 0 : i32
    return %c0_i32, %c0_i32_0 : i32, i32
  }
  func.func @transform_4(%arg0: i32) -> (i32, i32) {
    %c0_i32 = arith.constant 0 : i32
    %c0_i32_0 = arith.constant 0 : i32
    %c0_i32_1 = arith.constant 0 : i32
    return %c0_i32, %c0_i32_0 : i32, i32
  }
  func.func @transform_5(%arg0: i32) -> (i32, i32) {
    %c0_i32 = arith.constant 0 : i32
    %c0_i32_0 = arith.constant 0 : i32
    %c0_i32_1 = arith.constant 0 : i32
    return %c0_i32, %c0_i32_0 : i32, i32
  }
  func.func @transform_6(%arg0: i32) -> (i32, i32) {
    %c0_i32 = arith.constant 0 : i32
    %c0_i32_0 = arith.constant 0 : i32
    %c0_i32_1 = arith.constant 0 : i32
    return %c0_i32, %c0_i32_0 : i32, i32
  }
  func.func @transform_7(%arg0: i32) -> (i32, i32) {
    %c0_i32 = arith.constant 0 : i32
    %c0_i32_0 = arith.constant 0 : i32
    return %arg0, %c0_i32 : i32, i32
  }
}

</mosaic_0001>

<bundles_post_ra>
// kernel: critic_forward.1
= control target key start
LH: loop header
LB: loop body
LE: loop exit
PB: predicated region body
PF: predicated region fallthrough
CT: control target
= control target key end

     0   :  { %s1189_s24 = smov 0   ;;  %s1191_s25 = smov 0   ;;  %s1383_s0 = inlined_call_operand.vmem [shape: f32[40,16], index: 0, kind: input, shape index: {}]   ;;  %s1384_s1 = inlined_call_operand.vmem [shape: f32[16,128], index: 1, kind: input, shape index: {}]   ;;  %s1385_s2 = inlined_call_operand.vmem [shape: f32[1,128], index: 2, kind: input, shape index: {}]   ;;  %s1386_s3 = inlined_call_operand.vmem [shape: f32[128,128], index: 3, kind: input, shape index: {}]   ;;  %s1387_s4 = inlined_call_operand.vmem [shape: f32[1,128], index: 4, kind: input, shape index: {}]   ;;  %s1388_s5 = inlined_call_operand.vmem [shape: f32[128,4], index: 5, kind: input, shape index: {}]   ;;  %s1389_s6 = inlined_call_operand.vmem [shape: f32[1,4], index: 6, kind: input, shape index: {}]   ;;  %s1390_s7 = inlined_call_operand.vmem [shape: f32[40,4], index: 7, kind: output, shape index: {}]  }
   0x1   :  { %s1193_s26 = smov 0  }
   0x2 LB: > { %s1202_s27 = sadd.s32 4294967295, %s1115_s26   ;;  %s1204_s28 = sadd.s32 1, %s1115_s26   ;;  %s1115_s26 = sphi %s1193_s26, %s1394_s26   ;;  %s1111_s25 = sphi %s1191_s25, %s1393_s25   ;;  %s1107_s24 = sphi %s1189_s24, %s1392_s24  }
   0x3   : > { %s173_s29 = ssub.s32 %s1115_s26, %s1204_s28  ;;  %s176_s30 = sadd.s32 1, %s1111_s25 }
   0x4   : > { %p174_p0 = scmp.eq.s32.totalorder %s173_s29, 0  ;;  %p186_p1 = scmp.ne.s32.totalorder %s1111_s25, %s1107_s24 }
   0x5   : > { %p187_p2 = scmp.eq.s32.totalorder %s1202_s27, 2  ;;  %p827_p3 = scmp.ge.s32.totalorder %s1115_s26, 1 }
   0x6   : > { %s1212_s8 = scalar_select %p174_p0, %s1111_s25, %s176_s30  }
   0x7   : > { %p1214_p4 = por %p187_p2, %p186_p1  ;;  %p246_p5 = scmp.lt.s32.totalorder %s1115_s26, 4 }
   0x9   : > { %p247_p6 = pnand %p827_p3, %p246_p5 }
   0xa   : > { %s1225_s14 = sshll.u32 (!%p247_p6), %s1202_s27, 1 }
   0xb   : > { %250 = sbr.rel (%p247_p6) target bundleno = 661 (0x295), region = 48  ;;  %p286_p7 = scmp.lt.s32.totalorder (!%p247_p6), %s1225_s14, 4 }
  0x10   : > { %v303_v0 = vld [vmem:[%s1384_s1 + $0x8] sm:$0xff]  ;;  %v302_v1 = vld [vmem:[%s1384_s1] sm:$0xff]  ;;  %v414_v2 = vld [vmem:[%s1386_s3 + $0x78] sm:$0xff]  ;;  %s287_s21 = scalar_select %p286_p7, %s1225_s14, 4  ;;  %vm311_vm0 = vcmask 130048   ;;  %vm601_vm5 = vcmask 31744  }
  0x11   : > { %896 = vmatprep.subr.mxu0 %v303_v0  ;;  %903 = vmatprep.subr.mxu1 %v414_v2  ;;  %v413_v3 = vld [vmem:[%s1386_s3 + $0x70] sm:$0xff]  ;;  %v412_v4 = vld [vmem:[%s1386_s3 + $0x68] sm:$0xff]  ;;  %v411_v5 = vld [vmem:[%s1386_s3 + $0x60] sm:$0xff]  ;;  %s853_s12 = sshll.u32 (%p1214_p4), %s1202_s27, 4 }
  0x12   : > { %897 = vmatpush3.msra.mxu0 %v303_v0  ;;  %904 = vmatpush3.msra.mxu1 %v414_v2  ;;  %s830_s26 = sshll.u32 %s287_s21, 3  ;;  %v410_v6 = vld [vmem:[%s1386_s3 + $0x58] sm:$0xff]  ;;  %v409_v9 = vld [vmem:[%s1386_s3 + $0x50] sm:$0xff]  ;;  %v408_v10 = vld [vmem:[%s1386_s3 + $0x48] sm:$0xff]  ;;  %s1349_s16 = scalar_lea.vmem (%p1214_p4), %s1390_s7, %s853_s12  }
  0x13   : > { %898 = vmatprep.subr.mxu0 %v302_v1  ;;  %905 = vmatprep.subr.mxu1 %v413_v3  ;;  %s289_s10 = scalar_lea.vmem %s1383_s0, %s830_s26  ;;  %v407_v11 = vld [vmem:[%s1386_s3 + $0x40] sm:$0xff]  ;;  %v406_v12 = vld [vmem:[%s1386_s3 + $0x38] sm:$0xff]  ;;  %v405_v13 = vld [vmem:[%s1386_s3 + $0x30] sm:$0xff]  ;;  %s278_s26 = sand.u32 1, %s1107_s24  }
  0x14   : > { %899 = vmatpush3.msra.mxu0 %v302_v1  ;;  %906 = vmatpush3.msra.mxu1 %v413_v3  ;;  %v300_v7 = vld [vmem:[%s289_s10] sm:$0xff]  ;;  %v301_v8 = vld [vmem:[%s289_s10 + $0x8] sm:$0xff]  ;;  %v402_v16 = vld [vmem:[%s1386_s3 + $0x18] sm:$0xff]  ;;  %s828_s29 = sshll.u32 %s278_s26, 4  ;;  %s612_s24 = ssub.s32 (%p1214_p4), 5, %s1225_s14 }
  0x15   : > { %907 = vmatprep.subr.mxu1 %v412_v4  ;;  %900 = vmatprep.mubr.msk.f32.mxu0 %vm311_vm0, %v300_v7  ;;  %v404_v14 = vld [vmem:[%s1386_s3 + $0x28] sm:$0xff]  ;;  %v403_v15 = vld [vmem:[%s1386_s3 + $0x20] sm:$0xff]  ;;  %v401_v17 = vld [vmem:[%s1386_s3 + $0x10] sm:$0xff]  ;;  %s1338_s11 = scalar_lea.vmem [#allocation2], %s828_s29   ;;  %p613_p8 = scmp.lt.s32.totalorder (%p1214_p4), %s612_s24, 2 }
  0x16   : > { %908 = vmatpush3.msra.mxu1 %v412_v4  ;;  %901 = vmatmul.mubr.msk.f32.vlgmr.msra.gmra.mxu0 %vm311_vm0, %v301_v8  ;;  %v400_v18 = vld [vmem:[%s1386_s3 + $0x8] sm:$0xff]  ;;  %v399_v19 = vld [vmem:[%s1386_s3] sm:$0xff]  ;;  %v518_v20 = vld [vmem:[%s1388_s5 + $0x78] sm:$0xff] }
  0x17   : > { %909 = vmatprep.subr.mxu1 %v411_v5  ;;  %v517_v21 = vld [vmem:[%s1388_s5 + $0x70] sm:$0xff]  ;;  %938 = vmatprep.subr.mxu0 %v518_v20  ;;  %v516_v22 = vld [vmem:[%s1388_s5 + $0x68] sm:$0xff]  ;;  %v515_v23 = vld [vmem:[%s1388_s5 + $0x60] sm:$0xff] }
  0x18   : > { %910 = vmatpush3.msra.mxu1 %v411_v5  ;;  %939 = vmatpush3.msra.mxu0 %v518_v20  ;;  %v514_v24 = vld [vmem:[%s1388_s5 + $0x58] sm:$0xff]  ;;  %v513_v25 = vld [vmem:[%s1388_s5 + $0x50] sm:$0xff]  ;;  %v512_v26 = vld [vmem:[%s1388_s5 + $0x48] sm:$0xff] }
  0x19   : > { %911 = vmatprep.subr.mxu1 %v410_v6  ;;  %940 = vmatprep.subr.mxu0 %v517_v21  ;;  %v511_v27 = vld [vmem:[%s1388_s5 + $0x40] sm:$0xff]  ;;  %v510_v28 = vld [vmem:[%s1388_s5 + $0x38] sm:$0xff]  ;;  %v509_v29 = vld [vmem:[%s1388_s5 + $0x30] sm:$0xff] }
  0x1a   : > { %912 = vmatpush3.msra.mxu1 %v410_v6  ;;  %941 = vmatpush3.msra.mxu0 %v517_v21  ;;  %v508_v30 = vld [vmem:[%s1388_s5 + $0x28] sm:$0xff]  ;;  %v507_v31 = vld [vmem:[%s1388_s5 + $0x20] sm:$0xff]  ;;  %v506_v41 = vld [vmem:[%s1388_s5 + $0x18] sm:$0xff] }
  0x1b   : > { %913 = vmatprep.subr.mxu1 %v409_v9  ;;  %942 = vmatprep.subr.mxu0 %v516_v22  ;;  %v831_v32 = vld [vmem:[%s1385_s2] ss:$0 sm:$0xff]  ;;  %v505_v42 = vld [vmem:[%s1388_s5 + $0x10] sm:$0xff]  ;;  %v504_v43 = vld [vmem:[%s1388_s5 + $0x8] sm:$0xff] }
  0x1c   : > { %914 = vmatpush3.msra.mxu1 %v409_v9  ;;  %943 = vmatpush3.msra.mxu0 %v516_v22  ;;  %v503_v44 = vld [vmem:[%s1388_s5] sm:$0xff] }
  0x1d   : > { %915 = vmatprep.subr.mxu1 %v408_v10  ;;  %944 = vmatprep.subr.mxu0 %v515_v23  ;;  %v834_v45 = vld [vmem:[%s1387_s4] ss:$0 sm:$0xff] }
  0x1e   : > { %916 = vmatpush3.msra.mxu1 %v408_v10  ;;  %945 = vmatpush3.msra.mxu0 %v515_v23  ;;  %v835_v54 = vld [vmem:[%s1389_s6] ss:$0 sm:$0xff] }
  0x1f   : > { %917 = vmatprep.subr.mxu1 %v407_v11  ;;  %946 = vmatprep.subr.mxu0 %v514_v24 }
  0x20   : > { %918 = vmatpush3.msra.mxu1 %v407_v11  ;;  %947 = vmatpush3.msra.mxu0 %v514_v24 }
  0x21   : > { %919 = vmatprep.subr.mxu1 %v406_v12  ;;  %948 = vmatprep.subr.mxu0 %v513_v25 }
  0x22   : > { %920 = vmatpush3.msra.mxu1 %v406_v12  ;;  %949 = vmatpush3.msra.mxu0 %v513_v25 }
  0x23   : > { %921 = vmatprep.subr.mxu1 %v405_v13  ;;  %950 = vmatprep.subr.mxu0 %v512_v26 }
  0x24   : > { %922 = vmatpush3.msra.mxu1 %v405_v13  ;;  %951 = vmatpush3.msra.mxu0 %v512_v26 }
  0x25   : > { %923 = vmatprep.subr.mxu1 %v404_v14  ;;  %952 = vmatprep.subr.mxu0 %v511_v27 }
  0x26   : > { %924 = vmatpush3.msra.mxu1 %v404_v14  ;;  %953 = vmatpush3.msra.mxu0 %v511_v27 }
  0x27   : > { %925 = vmatprep.subr.mxu1 %v403_v15  ;;  %954 = vmatprep.subr.mxu0 %v510_v28 }
  0x28   : > { %926 = vmatpush3.msra.mxu1 %v403_v15  ;;  %955 = vmatpush3.msra.mxu0 %v510_v28 }
  0x29   : > { %927 = vmatprep.subr.mxu1 %v402_v16  ;;  %956 = vmatprep.subr.mxu0 %v509_v29 }
  0x2a   : > { %928 = vmatpush3.msra.mxu1 %v402_v16  ;;  %957 = vmatpush3.msra.mxu0 %v509_v29 }
  0x2b   : > { %929 = vmatprep.subr.mxu1 %v401_v17  ;;  %958 = vmatprep.subr.mxu0 %v508_v30 }
  0x2c   : > { %930 = vmatpush3.msra.mxu1 %v401_v17  ;;  %959 = vmatpush3.msra.mxu0 %v508_v30 }
  0x2d   : > { %931 = vmatprep.subr.mxu1 %v400_v18  ;;  %960 = vmatprep.subr.mxu0 %v507_v31 }
  0x2e   : > { %932 = vmatpush3.msra.mxu1 %v400_v18  ;;  %961 = vmatpush3.msra.mxu0 %v507_v31 }
  0x2f   : > { %933 = vmatprep.subr.mxu1 %v399_v19  ;;  %962 = vmatprep.subr.mxu0 %v506_v41 }
  0x30   : > { %934 = vmatpush3.msra.mxu1 %v399_v19  ;;  %963 = vmatpush3.msra.mxu0 %v506_v41 }
  0x31   : > { %964 = vmatprep.subr.mxu0 %v505_v42 }
  0x32   : > { %965 = vmatpush3.msra.mxu0 %v505_v42 }
  0x33   : > { %966 = vmatprep.subr.mxu0 %v504_v43 }
  0x34   : > { %967 = vmatpush3.msra.mxu0 %v504_v43 }
  0x35   : > { %968 = vmatprep.subr.mxu0 %v503_v44 }
  0x36   : > { %969 = vmatpush3.msra.mxu0 %v503_v44 }
  0xd6   : > { %v902_v33 = vpop.f32.mrf.mxu0 }
  0xd7   : > { %v390_v34 = vadd.f32 %v902_v33, %v831_v32 }
  0xd8   : > { %v384_v35 = vpop.f32.mrf.mxu0 }
  0xd9   : > { %v385_v36 = vadd.f32 %v831_v32, %v384_v35  ;;  %v396_v37 = vmul.f32 0.01, %v390_v34  ;;  %vm394_vm2 = vcmp.gt.f32.partialorder %v390_v34, 0.0 }
  0xdb   : > { %vm393_vm1 = vcmp.gt.f32.partialorder %v385_v36, 0.0  ;;  %v395_v38 = vmul.f32 0.01, %v385_v36  ;;  %v398_v40 = vsel %vm394_vm2, %v390_v34, %v396_v37 }
  0xdd   : > { %v397_v39 = vsel %vm393_vm1, %v385_v36, %v395_v38 }
  0xde   : > { %935 = vmatprep.mubr.f32.mxu1 %v397_v39 }
  0xdf   : > { %936 = vmatmul.mubr.f32.vlgmr.msra.gmra.mxu1 %v398_v40 }
 0x19f   : > { %v937_v46 = vpop.f32.mrf.mxu1 }
 0x1a0   : > { %v494_v47 = vadd.f32 %v937_v46, %v834_v45 }
 0x1a1   : > { %v488_v48 = vpop.f32.mrf.mxu1 }
 0x1a2   : > { %v489_v49 = vadd.f32 %v834_v45, %v488_v48  ;;  %v500_v50 = vmul.f32 0.01, %v494_v47  ;;  %vm498_vm3 = vcmp.gt.f32.partialorder %v494_v47, 0.0 }
 0x1a4   : > { %v499_v51 = vmul.f32 0.01, %v489_v49  ;;  %vm497_vm4 = vcmp.gt.f32.partialorder %v489_v49, 0.0  ;;  %v502_v53 = vsel %vm498_vm3, %v494_v47, %v500_v50 }
 0x1a6   : > { %v501_v52 = vsel %vm497_vm4, %v489_v49, %v499_v51 }
 0x1a7   : > { %970 = vmatprep.mubr.f32.mxu0 %v501_v52 }
 0x1a8   : > { %971 = vmatmul.mubr.f32.vlgmr.msra.gmra.mxu0 %v502_v53 }
 0x268   : > { %v972_v55 = vpop.f32.mrf.mxu0 }
 0x269   : > { %v598_v56 = vadd.f32 %v972_v55, %v835_v54  ;;  %610 = sbr.rel (!%p1214_p4) target bundleno = 661 (0x295), region = 52 }
 0x26a   : > { %v592_v57 = vpop.f32.mrf.mxu0 }
 0x26b   : > { %603 = vst.msk [vmem:[%s1338_s11 + $0x8] sm:$0xff] %vm601_vm5, %v598_v56  ;;  %v593_v58 = vadd.f32 %v835_v54, %v592_v57 }
 0x26d   : > { %602 = vst.msk [vmem:[%s1338_s11] sm:$0xff] %vm601_vm5, %v593_v58 }
 0x26e   : > { %s1396_s24 = smov (!%p613_p8, %s612_s24), 2 }
 0x26f   : > { %s838_s17 = sshll.u32 %s1396_s24, 7 }
 0x270   : > { %p841_p9 = scmp.eq.s32.totalorder %s838_s17, 0 }
 0x271   : > { %s1355_s18 = sshrl.u32 (!%p841_p9), %s1396_s24, 1 }
 0x272   : > { %621 = sbr.rel (%p841_p9) target bundleno = 661 (0x295), region = 56  ;;  %p842_p10 = scmp.le.s32.totalorder (!%p841_p9), %s1355_s18, 0 }
 0x277   : > { %780 = sbr.rel (%p842_p10) target bundleno = 644 (0x284), region = 132  ;;  %s1117_s27 = smov (!%p842_p10), %s1349_s16  }
 0x278   : > { %s1121_s9 = smov (!%p842_p10), %s1338_s11   ;;  %s1125_s14 = smov (!%p842_p10), 0  }
 0x279   : > { %s1129_s19 = smov (!%p842_p10), 0  }
 0x27c LB: >> { %v686_v59 = vld [vmem:[%s1123_s9] sm:$0xff]  ;;  %v688_v60 = vld [vmem:[%s1123_s9 + $0x8] sm:$0xff]  ;;  %s690_s20 = sadd.s32 1, %s1127_s14  ;;  %s680_s19 = sadd.s32 1, %s1131_s19   ;;  %s1131_s19 = sphi %s1129_s19, %s680_s19   ;;  %s1127_s14 = sphi %s1125_s14, %s1126_s14   ;;  %s1123_s9 = sphi %s1121_s9, %s695_s9   ;;  %s1119_s27 = sphi %s1117_s27, %s696_s27  }
 0x27d   : >> { %687 = vst [vmem:[%s1119_s27] sm:$0xff] %v686_v59  ;;  %689 = vst [vmem:[%s1119_s27 + $0x8] sm:$0xff] %v688_v60  ;;  %p691_p11 = scmp.ge.s32.totalorder %s690_s20, %s1355_s18  ;;  %p679_p12 = scmp.ge.s32.totalorder %s680_s19, %s1355_s18 }
 0x27f   : >> { %s1398_s20 = smov (%p691_p11, %s690_s20), 0  ;;  %682 = sbr.rel (!%p679_p12) target bundleno = 636 (0x27c), region = 138 }
 0x280   : >> { %s843_s21 = sshll.u32 %s1398_s20, 4  ;;  %s1126_s14 = smov %s1398_s20  }
 0x281   : >> { %s695_s9 = scalar_lea.vmem %s1338_s11, %s843_s21 [#allocation2]   ;;  %s696_s27 = scalar_lea.vmem %s1349_s16, %s843_s21  }
 0x284 PF: > { %s1365_s22 = sand.u32 1, %s1396_s24   ;;  %s854_s23 = sshll.u32 %s1355_s18, 4 }
 0x285   : > { %s701_s26 = scalar_lea.vmem %s1338_s11, %s854_s23 [#allocation2]   ;;  %s703_s29 = scalar_lea.vmem %s1349_s16, %s854_s23  }
 0x286   : > { %p848_p13 = scmp.le.s32.totalorder %s1365_s22, 0 }
 0x287   : > { %s1133_s30 = smov (!%p848_p13), %s703_s29   ;;  %s1137_s10 = smov (!%p848_p13), %s701_s26  }
 0x288   : > { %794 = sbr.rel (%p848_p13) target bundleno = 661 (0x295), region = 143  ;;  %s1141_s12 = smov (!%p848_p13), 0  }
 0x289   : > { %s1145_s13 = smov (!%p848_p13), 0  }
 0x28d LB: >> { %v713_v61 = vld [vmem:[%s1139_s10] sm:$0xff]  ;;  %s715_s24 = sadd.s32 1, %s1143_s12  ;;  %s707_s13 = sadd.s32 1, %s1147_s13   ;;  %s1147_s13 = sphi %s1145_s13, %s707_s13   ;;  %s1143_s12 = sphi %s1141_s12, %s1142_s12   ;;  %s1139_s10 = sphi %s1137_s10, %s720_s10   ;;  %s1135_s30 = sphi %s1133_s30, %s721_s30  }
 0x28e   : >> { %714 = vst [vmem:[%s1135_s30] sm:$0xff] %v713_v61  ;;  %p716_p0 = scmp.ge.s32.totalorder %s715_s24, %s1365_s22  ;;  %p706_p1 = scmp.ge.s32.totalorder %s707_s13, %s1365_s22 }
 0x290   : >> { %s1400_s24 = smov (%p716_p0, %s715_s24), 0  ;;  %709 = sbr.rel (!%p706_p1) target bundleno = 653 (0x28d), region = 149 }
 0x291   : >> { %s849_s11 = sshll.u32 %s1400_s24, 3  ;;  %s1142_s12 = smov %s1400_s24  }
 0x292   : >> { %s720_s10 = scalar_lea.vmem %s701_s26, %s849_s11 [#allocation2]   ;;  %s721_s30 = scalar_lea.vmem %s703_s29, %s849_s11  }
 0x295 PF: > { %p14_p2 = scmp.ge.s32.totalorder %s1204_s28, 5   ;;  %s1392_s24 = smov %s1111_s25 }
 0x296   : > { %s1393_s25 = smov %s1212_s8  ;;  %s1394_s26 = smov %s1204_s28 }
 0x297   :  { %16 = sbr.rel (!%p14_p2) target bundleno = 2 (0x2), region = 160 }

</bundles_post_ra>
